<compile_context>
chip_gen: v7x
topology: tpu7x:2x2x1
jax: 0.10.0
libtpu: 0.0.40
codegen_flags: <defaults>
</compile_context>

<pallas_src>
import numpy as np
import jax
import jax.numpy as jnp
from jax.experimental import pallas as pl
from jax.experimental.pallas import tpu as pltpu


def _mlp_kernel(x_ref, w1_ref, b1_ref, w2_ref, b2_ref, o_ref):
    # Linear(num_params -> hidden) + bias + ReLU
    h = jnp.dot(x_ref[...], w1_ref[...], preferred_element_type=jnp.float32)
    h = jnp.maximum(h + b1_ref[...], 0.0)
    # Linear(hidden -> embed_dim) + bias + ReLU
    y = jnp.dot(h, w2_ref[...], preferred_element_type=jnp.float32)
    y = jnp.maximum(y + b2_ref[...], 0.0)
    o_ref[...] = y.astype(o_ref.dtype)


def param_net_forward(x, w1, b1, w2, b2, *, block_b=8):
    """Pallas forward of ParamNet (inference semantics).

    x:  (N, num_params)
    w1: (16, num_params), b1: (16,)      -- torch Linear layout (out, in)
    w2: (embed_dim, 16),  b2: (embed_dim,)
    """
    # TODO(synk): nn.Dropout is a stochastic train-time op; identity at inference.
    N, P = x.shape
    H = w1.shape[0]
    E = w2.shape[0]

    x = x.astype(jnp.float32)
    # One-time host/XLA-side weight prep: (out,in) -> (in,out); biases as row vectors.
    w1t = jnp.asarray(w1, jnp.float32).T            # (P, H)
    w2t = jnp.asarray(w2, jnp.float32).T            # (H, E)
    b1r = jnp.asarray(b1, jnp.float32).reshape(1, H)
    b2r = jnp.asarray(b2, jnp.float32).reshape(1, E)

    # Batch tiling: tile size bb, pad N up to a multiple of bb (padded rows are
    # dropped after the call).  If N < block_b the single block equals the full
    # array, which satisfies the TPU block-shape rules.
    bb = block_b if N >= block_b else N
    Np = ((N + bb - 1) // bb) * bb
    if Np != N:
        x = jnp.pad(x, ((0, Np - N), (0, 0)))
    grid = (Np // bb,)

    flops = 2 * Np * (P * H + H * E)
    bytes_accessed = 4 * (Np * P + P * H + H + H * E + E + Np * E)

    out = pl.pallas_call(
        _mlp_kernel,
        out_shape=jax.ShapeDtypeStruct((Np, E), jnp.float32),
        grid=grid,
        in_specs=[
            pl.BlockSpec((bb, P), lambda i: (i, 0)),   # batch tile of activations
            pl.BlockSpec((P, H), lambda i: (0, 0)),    # w1^T (resident, tiny)
            pl.BlockSpec((1, H), lambda i: (0, 0)),    # b1
            pl.BlockSpec((H, E), lambda i: (0, 0)),    # w2^T
            pl.BlockSpec((1, E), lambda i: (0, 0)),    # b2
        ],
        out_specs=pl.BlockSpec((bb, E), lambda i: (i, 0)),
        compiler_params=pltpu.CompilerParams(
            dimension_semantics=("parallel",)),        # shard batch tiles across TCs (v7x)
        cost_estimate=pl.CostEstimate(
            flops=flops, transcendentals=0, bytes_accessed=bytes_accessed),
    )(x, w1t, b1r, w2t, b2r)

    return out[:N] if Np != N else out


def reference_forward(x, w1, b1, w2, b2):
    """Plain-JAX reference of ParamNet (dropout = identity)."""
    h = jnp.maximum(x @ w1.T + b1, 0.0)
    return jnp.maximum(h @ w2.T + b2, 0.0)


if __name__ == "__main__":
    key = jax.random.PRNGKey(0)
    kx, k1, kb1, k2, kb2 = jax.random.split(key, 5)

    NUM_PARAMS = 8     # len(params) in the spec
    HIDDEN = 16
    EMBED = 8          # default embed_dim
    N = 16             # small batch -> two parallel grid steps of 8 rows

    x = jax.random.normal(kx, (N, NUM_PARAMS), jnp.float32)

    # Deterministic synthetic parameters (torch nn.Linear init bounds).
    lim1 = 1.0 / np.sqrt(NUM_PARAMS)
    w1 = jax.random.uniform(k1, (HIDDEN, NUM_PARAMS), jnp.float32, -lim1, lim1)
    b1 = jax.random.uniform(kb1, (HIDDEN,), jnp.float32, -lim1, lim1)
    lim2 = 1.0 / np.sqrt(HIDDEN)
    w2 = jax.random.uniform(k2, (EMBED, HIDDEN), jnp.float32, -lim2, lim2)
    b2 = jax.random.uniform(kb2, (EMBED,), jnp.float32, -lim2, lim2)

    out = jax.block_until_ready(param_net_forward(x, w1, b1, w2, b2))
    assert out.shape == (N, EMBED), out.shape

    ref = jax.block_until_ready(reference_forward(x, w1, b1, w2, b2))
    out_np, ref_np = np.asarray(out), np.asarray(ref)
    if not np.allclose(out_np, ref_np, rtol=1e-5, atol=1e-5):
        raise AssertionError(
            f"mismatch vs reference, max abs diff {np.max(np.abs(out_np - ref_np))}")

    print("KERNEL_OK")
</pallas_src>

<mosaic_0001>
module attributes {stable_mosaic.version = 11 : i64} {
  func.func @_mlp_kernel(%arg0: i32, %arg1: memref<8x8xf32, #tpu.memory_space<vmem>>, %arg2: memref<8x16xf32, #tpu.memory_space<vmem>>, %arg3: memref<1x16xf32, #tpu.memory_space<vmem>>, %arg4: memref<16x8xf32, #tpu.memory_space<vmem>>, %arg5: memref<1x8xf32, #tpu.memory_space<vmem>>, %arg6: memref<8x8xf32, #tpu.memory_space<vmem>>) attributes {dimension_semantics = [#tpu.dimension_semantics<parallel>], iteration_bounds = array<i64: 2>, scalar_prefetch = 0 : i64, scratch_operands = 0 : i64, tpu.core_type = #tpu.core_type<tc>, window_params = [{transform_indices = @transform_0, window_bounds = array<i64: 8, 8>}, {pipeline_mode = #tpu.pipeline_mode<synchronous>, transform_indices = @transform_1, window_bounds = array<i64: 8, 16>}, {pipeline_mode = #tpu.pipeline_mode<synchronous>, transform_indices = @transform_2, window_bounds = array<i64: 1, 16>}, {pipeline_mode = #tpu.pipeline_mode<synchronous>, transform_indices = @transform_3, window_bounds = array<i64: 16, 8>}, {pipeline_mode = #tpu.pipeline_mode<synchronous>, transform_indices = @transform_4, window_bounds = array<i64: 1, 8>}, {transform_indices = @transform_5, window_bounds = array<i64: 8, 8>}]} {
    %c0 = arith.constant 0 : index
    %c0_0 = arith.constant 0 : index
    %0 = vector.load %arg1[%c0, %c0_0] : memref<8x8xf32, #tpu.memory_space<vmem>>, vector<8x8xf32>
    %c0_1 = arith.constant 0 : index
    %c0_2 = arith.constant 0 : index
    %1 = vector.load %arg2[%c0_1, %c0_2] : memref<8x16xf32, #tpu.memory_space<vmem>>, vector<8x16xf32>
    %cst = arith.constant dense<0.000000e+00> : vector<8x16xf32>
    %2 = tpu.matmul %0, %1, %cst {dimension_numbers = #tpu.dot_dimension_numbers<[1], [0], [0], [1], [0, 0, 1, 1], [], []>} : vector<8x8xf32>, vector<8x16xf32>, vector<8x16xf32> -> vector<8x16xf32>
    %c0_3 = arith.constant 0 : index
    %c0_4 = arith.constant 0 : index
    %3 = vector.load %arg3[%c0_3, %c0_4] : memref<1x16xf32, #tpu.memory_space<vmem>>, vector<1x16xf32>
    %4 = vector.broadcast %3 : vector<1x16xf32> to vector<8x16xf32>
    %5 = arith.addf %2, %4 : vector<8x16xf32>
    %cst_5 = arith.constant 0.000000e+00 : f32
    %6 = vector.broadcast %cst_5 : f32 to vector<8x16xf32>
    %7 = arith.maximumf %5, %6 : vector<8x16xf32>
    %c0_6 = arith.constant 0 : index
    %c0_7 = arith.constant 0 : index
    %8 = vector.load %arg4[%c0_6, %c0_7] : memref<16x8xf32, #tpu.memory_space<vmem>>, vector<16x8xf32>
    %cst_8 = arith.constant dense<0.000000e+00> : vector<8x8xf32>
    %9 = tpu.matmul %7, %8, %cst_8 {dimension_numbers = #tpu.dot_dimension_numbers<[1], [0], [0], [1], [0, 0, 1, 1], [], []>} : vector<8x16xf32>, vector<16x8xf32>, vector<8x8xf32> -> vector<8x8xf32>
    %c0_9 = arith.constant 0 : index
    %c0_10 = arith.constant 0 : index
    %10 = vector.load %arg5[%c0_9, %c0_10] : memref<1x8xf32, #tpu.memory_space<vmem>>, vector<1x8xf32>
    %11 = vector.broadcast %10 : vector<1x8xf32> to vector<8x8xf32>
    %12 = arith.addf %9, %11 : vector<8x8xf32>
    %cst_11 = arith.constant 0.000000e+00 : f32
    %13 = vector.broadcast %cst_11 : f32 to vector<8x8xf32>
    %14 = arith.maximumf %12, %13 : vector<8x8xf32>
    %c0_12 = arith.constant 0 : index
    %c0_13 = arith.constant 0 : index
    %15 = vector.load %arg6[%c0_12, %c0_13] : memref<8x8xf32, #tpu.memory_space<vmem>>, vector<8x8xf32>
    tpu.vector_store %arg6[%c0_12, %c0_13], %14 {strides = array<i32>} : memref<8x8xf32, #tpu.memory_space<vmem>>, vector<8x8xf32>,
    return
  }
  func.func @transform_0(%arg0: i32) -> (i32, i32) {
    %c0_i32 = arith.constant 0 : i32
    %c0_i32_0 = arith.constant 0 : i32
    return %arg0, %c0_i32 : i32, i32
  }
  func.func @transform_1(%arg0: i32) -> (i32, i32) {
    %c0_i32 = arith.constant 0 : i32
    %c0_i32_0 = arith.constant 0 : i32
    %c0_i32_1 = arith.constant 0 : i32
    return %c0_i32, %c0_i32_0 : i32, i32
  }
  func.func @transform_2(%arg0: i32) -> (i32, i32) {
    %c0_i32 = arith.constant 0 : i32
    %c0_i32_0 = arith.constant 0 : i32
    %c0_i32_1 = arith.constant 0 : i32
    return %c0_i32, %c0_i32_0 : i32, i32
  }
  func.func @transform_3(%arg0: i32) -> (i32, i32) {
    %c0_i32 = arith.constant 0 : i32
    %c0_i32_0 = arith.constant 0 : i32
    %c0_i32_1 = arith.constant 0 : i32
    return %c0_i32, %c0_i32_0 : i32, i32
  }
  func.func @transform_4(%arg0: i32) -> (i32, i32) {
    %c0_i32 = arith.constant 0 : i32
    %c0_i32_0 = arith.constant 0 : i32
    %c0_i32_1 = arith.constant 0 : i32
    return %c0_i32, %c0_i32_0 : i32, i32
  }
  func.func @transform_5(%arg0: i32) -> (i32, i32) {
    %c0_i32 = arith.constant 0 : i32
    %c0_i32_0 = arith.constant 0 : i32
    return %arg0, %c0_i32 : i32, i32
  }
}

</mosaic_0001>

<bundles_post_ra>
// kernel: tpu_custom_call.1
= control target key start
LH: loop header
LB: loop body
LE: loop exit
PB: predicated region body
PF: predicated region fallthrough
CT: control target
= control target key end

     0   :  { %s527_s18 = smov 0   ;;  %s561_s0 = inlined_call_operand.vmem [shape: f32[16,8], index: 0, kind: input, shape index: {}]   ;;  %s562_s1 = inlined_call_operand.vmem [shape: f32[8,16], index: 1, kind: input, shape index: {}]   ;;  %s563_s2 = inlined_call_operand.vmem [shape: f32[1,16], index: 2, kind: input, shape index: {}]   ;;  %s564_s3 = inlined_call_operand.vmem [shape: f32[16,8], index: 3, kind: input, shape index: {}]   ;;  %s565_s4 = inlined_call_operand.vmem [shape: f32[1,8], index: 4, kind: input, shape index: {}]   ;;  %s566_s5 = inlined_call_operand.vmem [shape: f32[16,8], index: 5, kind: output, shape index: {}]  }
   0x1 LB: > { %s442_s19 = sadd.s32 4294967295, %s492_s18   ;;  %p446_p0 = scmp.ge.s32.totalorder %s492_s18, 1  ;;  %s492_s18 = sphi %s527_s18, %s15_s18  }
   0x2   : > { %p186_p1 = scmp.lt.s32.totalorder %s492_s18, 3 }
   0x4   : > { %p187_p2 = pnand %p446_p0, %p186_p1 }
   0x5   : > { %v221_v0 = vld [vmem:[%s562_s1] sm:$0xff] (!%p187_p2)  ;;  %p212_p3 = scmp.lt.s32.totalorder (!%p187_p2), %s442_s19, 1  ;;  %v494_v1 = vmov (!%p187_p2), 0.0   ;;  %vm495_vm0 = vmmov (!%p187_p2), 0   ;;  %vm229_vm1 = vcmask (!%p187_p2), 64512   ;;  %v305_v4 = vld [vmem:[%s564_s3 + $0x8] sm:$0xff] (!%p187_p2) }
   0x6   : > { %190 = sbr.rel (%p187_p2) target bundleno = 450 (0x1c2), region = 40  ;;  %460 = vmatprep.subr.mxu0 (!%p187_p2), %v494_v1  ;;  %462 = vmatprep.mubr.msk.f32.mxu0 (!%p187_p2), %vm495_vm0, %v494_v1  ;;  %v304_v3 = vld [vmem:[%s564_s3] sm:$0xff] (!%p187_p2)  ;;  %v496_v6 = vmov (!%p187_p2), 0.0|0.0   ;;  %vm313_vm2 = vcmask (!%p187_p2), 130048  }
   0x7   : > { %461 = vmatpush3.msra.mxu0 (!%p187_p2), %v221_v0  ;;  %469 = vmatprep.mubr.msk.f32.mxu1 (!%p187_p2), %vm495_vm0, %v494_v1  ;;  %v473_v5 = vpack.c.bf16 (!%p187_p2), %v305_v4, %v304_v3  ;;  %v449_v7 = vld [vmem:[%s563_s2] ss:$0 sm:$0xff] (!%p187_p2) }
   0x8   : > { %472 = vmatprep.subr.bf16.mxu1 (!%p187_p2), %v496_v6  ;;  %v451_v12 = vld [vmem:[%s565_s4] ss:$0 sm:$0xff] (!%p187_p2) }
   0x9   : > { %474 = vmatpush3.bf16.msra.mxu1 (!%p187_p2), %v473_v5 }
   0xd   : > { %s568_s19 = smov (!%p212_p3, %s442_s19), 1 }
   0xe   : > { %s447_s22 = sshll.u32 %s568_s19, 3 }
   0xf   : > { %s215_s25 = scalar_lea.vmem %s561_s0, %s447_s22  ;;  %s219_s11 = scalar_lea.vmem %s566_s5, %s447_s22 }
  0x10   : > { %v220_v2 = vld [vmem:[%s215_s25] sm:$0xff] }
  0x11   : > { %463 = vmatmul.mubr.msk.f32.vlgmr.msra.gmra.mrb[0].mxu0 %vm229_vm1, %v220_v2 }
  0xe4   : > { %v299_v8 = vpop.f32.mrb[0].mxu0 }
  0xe5   : > { %v300_v9 = vadd.f32 %v449_v7, %v299_v8  ;;  %v464_v10 = vpop.f32.mrb[1].mxu0 }
  0xe7   : > { %v303_v11 = vmax.f32 %v300_v9, 0.0 }
  0xe9   : > { %470 = vmatmul.mubr.msk.f32.vlgmr.msra.gmra.mrb[0].mxu1 %vm313_vm2, %v303_v11 }
 0x1bc   : > { %v383_v13 = vpop.f32.mrb[0].mxu1 }
 0x1bd   : > { %v384_v14 = vadd.f32 %v451_v12, %v383_v13  ;;  %v471_v15 = vpop.f32.mrb[1].mxu1 }
 0x1bf   : > { %v387_v16 = vmax.f32 %v384_v14, 0.0 }
 0x1c1   : > { %388 = vst.msk [vmem:[%s219_s11] sm:$0xff] %vm229_vm1, %v387_v16 }
 0x1c2 PF: > { %s15_s18 = sadd.s32 1, %s492_s18  }
 0x1c3   : > { %p12_p4 = scmp.ge.s32.totalorder %s15_s18, 4  }
 0x1c5   :  { %14 = sbr.rel (!%p12_p4) target bundleno = 1 (0x1), region = 70 }

</bundles_post_ra>
